<compile_context>
chip_gen: v5e
topology: v5e:2x2
jax: 0.10.0
libtpu: 0.0.40
codegen_flags: <defaults>
</compile_context>

<pallas_src>
import functools

import jax
import jax.numpy as jnp
from jax.experimental import pallas as pl
from jax.experimental.pallas import tpu as pltpu

BN_EPS = 1e-5


def _deep_conv_block_kernel(x_ref, w1_ref, w2_ref, o_ref, xr_sc, hr_sc, *,
                            f_dim, cout):
    """Fused DeepConvBlock forward.

    x_ref  : (B, T, F*Cin)        f32  NHWC input with F and Cin merged into lanes
    w1_ref : (3, F*Cin,  F*Cout)  bf16 banded conv1 weight (one matrix per kh)
    w2_ref : (3, F*Cout, F*Cout)  bf16 banded conv2 weight
    o_ref  : (B*T, F*Cout)        f32  lane-dense output rows
    xr_sc  : (B, T+2, F*Cin)      f32  VMEM scratch: T-padded conv1 input
    hr_sc  : (B, T+2, F*Cout)     f32  VMEM scratch: T-padded intermediate h
    """
    B, T, fcin = x_ref.shape
    fcout = o_ref.shape[-1]
    inv_n = 1.0 / float(B * T * f_dim)

    def conv_rows(rows_sc, w_ref):
        """3x3 'same' conv as 3 banded (row-shifted) matmuls; bf16 MXU, f32 acc."""
        k_dim = rows_sc.shape[-1]
        acc = jnp.zeros((B * T, fcout), jnp.float32)
        for kh in range(3):
            patch = rows_sc[:, kh:kh + T, :].reshape(B * T, k_dim)
            acc = acc + jnp.dot(patch.astype(jnp.bfloat16), w_ref[kh],
                                preferred_element_type=jnp.float32)
        return acc

    def channel_reduce(stats):
        """stats: (R, F*Cout) f32. Lane l's channel is l % cout; returns the
        per-channel totals broadcast back into the same lane-dense layout.
        Power-of-two F -> log2(F) cyclic rolls (XLU); otherwise linear."""
        groups, period = f_dim, cout
        if groups & (groups - 1) == 0:
            total = stats
            shift = period
            while shift < groups * period:
                total = total + pltpu.roll(total, shift, 1)
                shift *= 2
            return total
        total = stats
        for g in range(1, groups):
            total = total + pltpu.roll(stats, g * period, 1)
        return total

    def bn_relu(acc):
        """Train-mode BatchNorm2d (batch stats, biased var, gamma=1, beta=0) + ReLU.
        One pass for sum / sum-of-squares; both stats share one roll-tree."""
        col_sum = jnp.sum(acc, axis=0, keepdims=True)           # (1, F*C)
        col_sq = jnp.sum(acc * acc, axis=0, keepdims=True)      # (1, F*C)
        stats = channel_reduce(
            jnp.concatenate([col_sum, col_sq], axis=0)) * inv_n  # (2, F*C)
        mean_b = stats[0:1, :]
        var_b = jnp.maximum(stats[1:2, :] - mean_b * mean_b, 0.0)
        return jnp.maximum((acc - mean_b) * jax.lax.rsqrt(var_b + BN_EPS), 0.0)

    # ---- ConvBlock 1: pad T in-kernel (boundary rows only), conv + BN + ReLU ----
    zpad_x = jnp.zeros((B, 1, fcin), xr_sc.dtype)
    xr_sc[:, 0:1, :] = zpad_x
    xr_sc[:, T + 1:T + 2, :] = zpad_x
    xr_sc[:, 1:T + 1, :] = x_ref[...]
    h = bn_relu(conv_rows(xr_sc, w1_ref))                        # (B*T, F*Cout)

    # ---- ConvBlock 2: intermediate h stays in VMEM (no HBM round trip) ----
    zpad_h = jnp.zeros((B, 1, fcout), hr_sc.dtype)
    hr_sc[:, 0:1, :] = zpad_h
    hr_sc[:, T + 1:T + 2, :] = zpad_h
    hr_sc[:, 1:T + 1, :] = h.reshape(B, T, fcout)
    o_ref[...] = bn_relu(conv_rows(hr_sc, w2_ref))               # lane-dense store


def _band_weights(w_hwio, f_dim):
    """Fold the kw (F-axis) stencil and its zero padding into per-kh banded
    matrices: band[kh][fi*Cin+ci, fo*Cout+co] = w[kh, fi-fo+1, ci, co] when
    0 <= fi-fo+1 < 3, else 0.  Returns (3, F*Cin, F*Cout) bf16 (MXU operand)."""
    _, _, cin, cout = w_hwio.shape
    fi = jnp.arange(f_dim)[:, None]
    fo = jnp.arange(f_dim)[None, :]
    kw = fi - fo + 1
    valid = (kw >= 0) & (kw <= 2)
    band = w_hwio[:, jnp.clip(kw, 0, 2)]                       # (3, F, F, Cin, Cout)
    band = jnp.where(valid[None, :, :, None, None], band, 0.0)
    band = jnp.transpose(band, (0, 1, 3, 2, 4))                # (3, F, Cin, F, Cout)
    return band.reshape(3, f_dim * cin, f_dim * cout).astype(jnp.bfloat16)


@jax.jit
def deep_conv_block(x_nchw, w1_hwio, w2_hwio):
    """DeepConvBlock.forward: NCHW in, NCHW out (PyTorch train-mode BN semantics)."""
    B, c_in, T, f_dim = x_nchw.shape
    c_out = w1_hwio.shape[-1]

    x_rows = jnp.transpose(x_nchw, (0, 2, 3, 1)).reshape(B, T, f_dim * c_in)
    wb1 = _band_weights(w1_hwio, f_dim)                        # (3, F*Cin,  F*Cout)
    wb2 = _band_weights(w2_hwio, f_dim)                        # (3, F*Cout, F*Cout)

    kernel = functools.partial(_deep_conv_block_kernel, f_dim=f_dim, cout=c_out)
    # TODO(synk): for production-sized activations, add a grid over B/T ("parallel",
    # feeds both v7x TensorCores) with a two-pass cross-tile BN reduction, tile F for
    # the banded weights, and re-derive tile sizes against 64 MiB VMEM on v7x.
    out_rows = pl.pallas_call(
        kernel,
        out_shape=jax.ShapeDtypeStruct((B * T, f_dim * c_out), jnp.float32),
        in_specs=[
            pl.BlockSpec(x_rows.shape, lambda: (0, 0, 0)),
            pl.BlockSpec(wb1.shape, lambda: (0, 0, 0)),
            pl.BlockSpec(wb2.shape, lambda: (0, 0, 0)),
        ],
        out_specs=pl.BlockSpec((B * T, f_dim * c_out), lambda: (0, 0)),
        scratch_shapes=[
            pltpu.VMEM((B, T + 2, f_dim * c_in), jnp.float32),
            pltpu.VMEM((B, T + 2, f_dim * c_out), jnp.float32),
        ],
        compiler_params=pltpu.CompilerParams(vmem_limit_bytes=32 * 1024 * 1024),
    )(x_rows, wb1, wb2)

    out = out_rows.reshape(B, T, f_dim, c_out)
    return jnp.transpose(out, (0, 3, 1, 2))                    # NHWC rows -> NCHW


def xavier_uniform_conv(key, out_c, in_c, kh=3, kw=3):
    """Deterministic xavier_uniform init for a Conv2d weight, returned as HWIO."""
    fan_in = in_c * kh * kw
    fan_out = out_c * kh * kw
    bound = (6.0 / (fan_in + fan_out)) ** 0.5
    w_oihw = jax.random.uniform(key, (out_c, in_c, kh, kw), jnp.float32,
                                -bound, bound)
    return jnp.transpose(w_oihw, (2, 3, 1, 0))                 # OIHW -> HWIO


def _ref_conv_bn_relu(x_nhwc, w_hwio):
    """Pure-JAX f32 reference for correctness checking."""
    y = jax.lax.conv_general_dilated(
        x_nhwc, w_hwio, window_strides=(1, 1), padding="SAME",
        dimension_numbers=("NHWC", "HWIO", "NHWC"))
    mean = jnp.mean(y, axis=(0, 1, 2), keepdims=True)
    var = jnp.mean((y - mean) ** 2, axis=(0, 1, 2), keepdims=True)
    return jnp.maximum((y - mean) * jax.lax.rsqrt(var + BN_EPS), 0.0)


def _ref_deep_conv_block(x_nchw, w1, w2):
    x = jnp.transpose(x_nchw, (0, 2, 3, 1))
    h = _ref_conv_bn_relu(x, w1)
    h = _ref_conv_bn_relu(h, w2)
    return jnp.transpose(h, (0, 3, 1, 2))


if __name__ == "__main__":
    key = jax.random.PRNGKey(0)
    k_x, k_w1, k_w2 = jax.random.split(key, 3)

    B, C_in, C_out, T, F = 2, 4, 8, 16, 16
    x = jax.random.normal(k_x, (B, C_in, T, F), jnp.float32)   # NCHW, like PyTorch
    w1 = xavier_uniform_conv(k_w1, C_out, C_in)                # conv1: (3,3,Cin,Cout)
    w2 = xavier_uniform_conv(k_w2, C_out, C_out)               # conv2: (3,3,Cout,Cout)

    out = jax.block_until_ready(deep_conv_block(x, w1, w2))

    ref = _ref_deep_conv_block(x, w1, w2)
    assert out.shape == (B, C_out, T, F), out.shape
    max_err = float(jnp.max(jnp.abs(out - ref)))
    # bf16 MXU operands with f32 accumulation vs. an all-f32 reference.
    assert max_err < 2e-2, max_err
    print("KERNEL_OK")
</pallas_src>

<mosaic_0001>
module attributes {stable_mosaic.version = 11 : i64} {
  func.func @_deep_conv_block_kernel(%arg0: memref<2x16x64xf32, #tpu.memory_space<vmem>>, %arg1: memref<3x64x128xbf16, #tpu.memory_space<vmem>>, %arg2: memref<3x128x128xbf16, #tpu.memory_space<vmem>>, %arg3: memref<32x128xf32, #tpu.memory_space<vmem>>, %arg4: memref<2x18x64xf32, #tpu.memory_space<vmem>>, %arg5: memref<2x18x128xf32, #tpu.memory_space<vmem>>) attributes {dimension_semantics = [], scalar_prefetch = 0 : i64, scratch_operands = 2 : i64, tpu.core_type = #tpu.core_type<tc>} {
    %cst = arith.constant 0.000000e+00 : f32
    %0 = vector.broadcast %cst : f32 to vector<2x1x64xf32>
    %c0 = arith.constant 0 : index
    %c0_0 = arith.constant 0 : index
    %c0_1 = arith.constant 0 : index
    %1 = vector.load %arg4[%c0, %c0_0, %c0_1] : memref<2x18x64xf32, #tpu.memory_space<vmem>>, vector<2x1x64xf32>
    tpu.vector_store %arg4[%c0, %c0_0, %c0_1], %0 {strides = array<i32>} : memref<2x18x64xf32, #tpu.memory_space<vmem>>, vector<2x1x64xf32>,
    %c0_2 = arith.constant 0 : index
    %c17 = arith.constant 17 : index
    %c0_3 = arith.constant 0 : index
    %2 = vector.load %arg4[%c0_2, %c17, %c0_3] : memref<2x18x64xf32, #tpu.memory_space<vmem>>, vector<2x1x64xf32>
    tpu.vector_store %arg4[%c0_2, %c17, %c0_3], %0 {strides = array<i32>} : memref<2x18x64xf32, #tpu.memory_space<vmem>>, vector<2x1x64xf32>,
    %c0_4 = arith.constant 0 : index
    %c0_5 = arith.constant 0 : index
    %c0_6 = arith.constant 0 : index
    %3 = vector.load %arg0[%c0_4, %c0_5, %c0_6] : memref<2x16x64xf32, #tpu.memory_space<vmem>>, vector<2x16x64xf32>
    %c0_7 = arith.constant 0 : index
    %c1 = arith.constant 1 : index
    %c0_8 = arith.constant 0 : index
    %4 = vector.load %arg4[%c0_7, %c1, %c0_8] : memref<2x18x64xf32, #tpu.memory_space<vmem>>, vector<2x16x64xf32>
    tpu.vector_store %arg4[%c0_7, %c1, %c0_8], %3 {strides = array<i32>} : memref<2x18x64xf32, #tpu.memory_space<vmem>>, vector<2x16x64xf32>,
    %cst_9 = arith.constant 0.000000e+00 : f32
    %5 = vector.broadcast %cst_9 : f32 to vector<32x128xf32>
    %c0_10 = arith.constant 0 : index
    %c0_11 = arith.constant 0 : index
    %c0_12 = arith.constant 0 : index
    %6 = vector.load %arg4[%c0_10, %c0_11, %c0_12] : memref<2x18x64xf32, #tpu.memory_space<vmem>>, vector<2x16x64xf32>
    %7 = vector.shape_cast %6 : vector<2x16x64xf32> to vector<32x64xf32>
    %8 = arith.truncf %7 : vector<32x64xf32> to vector<32x64xbf16>
    %c0_13 = arith.constant 0 : index
    %c0_14 = arith.constant 0 : index
    %c0_15 = arith.constant 0 : index
    %9 = vector.load %arg1[%c0_13, %c0_14, %c0_15] : memref<3x64x128xbf16, #tpu.memory_space<vmem>>, vector<1x64x128xbf16>
    %10 = vector.shape_cast %9 : vector<1x64x128xbf16> to vector<64x128xbf16>
    %cst_16 = arith.constant dense<0.000000e+00> : vector<32x128xf32>
    %11 = tpu.matmul %8, %10, %cst_16 {dimension_numbers = #tpu.dot_dimension_numbers<[1], [0], [0], [1], [0, 0, 1, 1], [], []>} : vector<32x64xbf16>, vector<64x128xbf16>, vector<32x128xf32> -> vector<32x128xf32>
    %12 = arith.addf %5, %11 : vector<32x128xf32>
    %c0_17 = arith.constant 0 : index
    %c1_18 = arith.constant 1 : index
    %c0_19 = arith.constant 0 : index
    %13 = vector.load %arg4[%c0_17, %c1_18, %c0_19] : memref<2x18x64xf32, #tpu.memory_space<vmem>>, vector<2x16x64xf32>
    %14 = vector.shape_cast %13 : vector<2x16x64xf32> to vector<32x64xf32>
    %15 = arith.truncf %14 : vector<32x64xf32> to vector<32x64xbf16>
    %c1_20 = arith.constant 1 : index
    %c0_21 = arith.constant 0 : index
    %c0_22 = arith.constant 0 : index
    %16 = vector.load %arg1[%c1_20, %c0_21, %c0_22] : memref<3x64x128xbf16, #tpu.memory_space<vmem>>, vector<1x64x128xbf16>
    %17 = vector.shape_cast %16 : vector<1x64x128xbf16> to vector<64x128xbf16>
    %cst_23 = arith.constant dense<0.000000e+00> : vector<32x128xf32>
    %18 = tpu.matmul %15, %17, %cst_23 {dimension_numbers = #tpu.dot_dimension_numbers<[1], [0], [0], [1], [0, 0, 1, 1], [], []>} : vector<32x64xbf16>, vector<64x128xbf16>, vector<32x128xf32> -> vector<32x128xf32>
    %19 = arith.addf %12, %18 : vector<32x128xf32>
    %c0_24 = arith.constant 0 : index
    %c2 = arith.constant 2 : index
    %c0_25 = arith.constant 0 : index
    %20 = vector.load %arg4[%c0_24, %c2, %c0_25] : memref<2x18x64xf32, #tpu.memory_space<vmem>>, vector<2x16x64xf32>
    %21 = vector.shape_cast %20 : vector<2x16x64xf32> to vector<32x64xf32>
    %22 = arith.truncf %21 : vector<32x64xf32> to vector<32x64xbf16>
    %c2_26 = arith.constant 2 : index
    %c0_27 = arith.constant 0 : index
    %c0_28 = arith.constant 0 : index
    %23 = vector.load %arg1[%c2_26, %c0_27, %c0_28] : memref<3x64x128xbf16, #tpu.memory_space<vmem>>, vector<1x64x128xbf16>
    %24 = vector.shape_cast %23 : vector<1x64x128xbf16> to vector<64x128xbf16>
    %cst_29 = arith.constant dense<0.000000e+00> : vector<32x128xf32>
    %25 = tpu.matmul %22, %24, %cst_29 {dimension_numbers = #tpu.dot_dimension_numbers<[1], [0], [0], [1], [0, 0, 1, 1], [], []>} : vector<32x64xbf16>, vector<64x128xbf16>, vector<32x128xf32> -> vector<32x128xf32>
    %26 = arith.addf %19, %25 : vector<32x128xf32>
    %cst_30 = arith.constant dense<0.000000e+00> : vector<128xf32>
    %27 = vector.multi_reduction <add>, %26, %cst_30 [0] : vector<32x128xf32> to vector<128xf32>
    %28 = vector.shape_cast %27 : vector<128xf32> to vector<1x128xf32>
    %29 = arith.mulf %26, %26 : vector<32x128xf32>
    %cst_31 = arith.constant dense<0.000000e+00> : vector<128xf32>
    %30 = vector.multi_reduction <add>, %29, %cst_31 [0] : vector<32x128xf32> to vector<128xf32>
    %31 = vector.shape_cast %30 : vector<128xf32> to vector<1x128xf32>
    %32 = tpu.concatenate %28, %31 in 0 : vector<1x128xf32>, vector<1x128xf32> -> vector<2x128xf32>
    %c8_i32 = arith.constant 8 : i32
    %33 = tpu.dynamic_rotate %32 by %c8_i32 dim 1 : vector<2x128xf32>, i32 -> vector<2x128xf32>
    %34 = arith.addf %32, %33 : vector<2x128xf32>
    %c16_i32 = arith.constant 16 : i32
    %35 = tpu.dynamic_rotate %34 by %c16_i32 dim 1 : vector<2x128xf32>, i32 -> vector<2x128xf32>
    %36 = arith.addf %34, %35 : vector<2x128xf32>
    %c32_i32 = arith.constant 32 : i32
    %37 = tpu.dynamic_rotate %36 by %c32_i32 dim 1 : vector<2x128xf32>, i32 -> vector<2x128xf32>
    %38 = arith.addf %36, %37 : vector<2x128xf32>
    %c64_i32 = arith.constant 64 : i32
    %39 = tpu.dynamic_rotate %38 by %c64_i32 dim 1 : vector<2x128xf32>, i32 -> vector<2x128xf32>
    %40 = arith.addf %38, %39 : vector<2x128xf32>
    %cst_32 = arith.constant 0.001953125 : f32
    %41 = vector.broadcast %cst_32 : f32 to vector<2x128xf32>
    %42 = arith.mulf %40, %41 : vector<2x128xf32>
    %43 = vector.extract_strided_slice %42 {offsets = [0, 0], sizes = [1, 128], strides = [1, 1]} : vector<2x128xf32> to vector<1x128xf32>
    %44 = vector.extract_strided_slice %42 {offsets = [1, 0], sizes = [1, 128], strides = [1, 1]} : vector<2x128xf32> to vector<1x128xf32>
    %45 = arith.mulf %43, %43 : vector<1x128xf32>
    %46 = arith.subf %44, %45 : vector<1x128xf32>
    %cst_33 = arith.constant 0.000000e+00 : f32
    %47 = vector.broadcast %cst_33 : f32 to vector<1x128xf32>
    %48 = arith.maximumf %46, %47 : vector<1x128xf32>
    %49 = vector.broadcast %43 : vector<1x128xf32> to vector<32x128xf32>
    %50 = arith.subf %26, %49 : vector<32x128xf32>
    %cst_34 = arith.constant 9.99999974E-6 : f32
    %51 = vector.broadcast %cst_34 : f32 to vector<1x128xf32>
    %52 = arith.addf %48, %51 : vector<1x128xf32>
    %53 = math.rsqrt %52 : vector<1x128xf32>
    %54 = vector.broadcast %53 : vector<1x128xf32> to vector<32x128xf32>
    %55 = arith.mulf %50, %54 : vector<32x128xf32>
    %cst_35 = arith.constant 0.000000e+00 : f32
    %56 = vector.broadcast %cst_35 : f32 to vector<32x128xf32>
    %57 = arith.maximumf %55, %56 : vector<32x128xf32>
    %cst_36 = arith.constant 0.000000e+00 : f32
    %58 = vector.broadcast %cst_36 : f32 to vector<2x1x128xf32>
    %c0_37 = arith.constant 0 : index
    %c0_38 = arith.constant 0 : index
    %c0_39 = arith.constant 0 : index
    %59 = vector.load %arg5[%c0_37, %c0_38, %c0_39] : memref<2x18x128xf32, #tpu.memory_space<vmem>>, vector<2x1x128xf32>
    tpu.vector_store %arg5[%c0_37, %c0_38, %c0_39], %58 {strides = array<i32>} : memref<2x18x128xf32, #tpu.memory_space<vmem>>, vector<2x1x128xf32>,
    %c0_40 = arith.constant 0 : index
    %c17_41 = arith.constant 17 : index
    %c0_42 = arith.constant 0 : index
    %60 = vector.load %arg5[%c0_40, %c17_41, %c0_42] : memref<2x18x128xf32, #tpu.memory_space<vmem>>, vector<2x1x128xf32>
    tpu.vector_store %arg5[%c0_40, %c17_41, %c0_42], %58 {strides = array<i32>} : memref<2x18x128xf32, #tpu.memory_space<vmem>>, vector<2x1x128xf32>,
    %61 = vector.shape_cast %57 : vector<32x128xf32> to vector<2x16x128xf32>
    %c0_43 = arith.constant 0 : index
    %c1_44 = arith.constant 1 : index
    %c0_45 = arith.constant 0 : index
    %62 = vector.load %arg5[%c0_43, %c1_44, %c0_45] : memref<2x18x128xf32, #tpu.memory_space<vmem>>, vector<2x16x128xf32>
    tpu.vector_store %arg5[%c0_43, %c1_44, %c0_45], %61 {strides = array<i32>} : memref<2x18x128xf32, #tpu.memory_space<vmem>>, vector<2x16x128xf32>,
    %cst_46 = arith.constant 0.000000e+00 : f32
    %63 = vector.broadcast %cst_46 : f32 to vector<32x128xf32>
    %c0_47 = arith.constant 0 : index
    %c0_48 = arith.constant 0 : index
    %c0_49 = arith.constant 0 : index
    %64 = vector.load %arg5[%c0_47, %c0_48, %c0_49] : memref<2x18x128xf32, #tpu.memory_space<vmem>>, vector<2x16x128xf32>
    %65 = vector.shape_cast %64 : vector<2x16x128xf32> to vector<32x128xf32>
    %66 = arith.truncf %65 : vector<32x128xf32> to vector<32x128xbf16>
    %c0_50 = arith.constant 0 : index
    %c0_51 = arith.constant 0 : index
    %c0_52 = arith.constant 0 : index
    %67 = vector.load %arg2[%c0_50, %c0_51, %c0_52] : memref<3x128x128xbf16, #tpu.memory_space<vmem>>, vector<1x128x128xbf16>
    %68 = vector.shape_cast %67 : vector<1x128x128xbf16> to vector<128x128xbf16>
    %cst_53 = arith.constant dense<0.000000e+00> : vector<32x128xf32>
    %69 = tpu.matmul %66, %68, %cst_53 {dimension_numbers = #tpu.dot_dimension_numbers<[1], [0], [0], [1], [0, 0, 1, 1], [], []>} : vector<32x128xbf16>, vector<128x128xbf16>, vector<32x128xf32> -> vector<32x128xf32>
    %70 = arith.addf %63, %69 : vector<32x128xf32>
    %c0_54 = arith.constant 0 : index
    %c1_55 = arith.constant 1 : index
    %c0_56 = arith.constant 0 : index
    %71 = vector.load %arg5[%c0_54, %c1_55, %c0_56] : memref<2x18x128xf32, #tpu.memory_space<vmem>>, vector<2x16x128xf32>
    %72 = vector.shape_cast %71 : vector<2x16x128xf32> to vector<32x128xf32>
    %73 = arith.truncf %72 : vector<32x128xf32> to vector<32x128xbf16>
    %c1_57 = arith.constant 1 : index
    %c0_58 = arith.constant 0 : index
    %c0_59 = arith.constant 0 : index
    %74 = vector.load %arg2[%c1_57, %c0_58, %c0_59] : memref<3x128x128xbf16, #tpu.memory_space<vmem>>, vector<1x128x128xbf16>
    %75 = vector.shape_cast %74 : vector<1x128x128xbf16> to vector<128x128xbf16>
    %cst_60 = arith.constant dense<0.000000e+00> : vector<32x128xf32>
    %76 = tpu.matmul %73, %75, %cst_60 {dimension_numbers = #tpu.dot_dimension_numbers<[1], [0], [0], [1], [0, 0, 1, 1], [], []>} : vector<32x128xbf16>, vector<128x128xbf16>, vector<32x128xf32> -> vector<32x128xf32>
    %77 = arith.addf %70, %76 : vector<32x128xf32>
    %c0_61 = arith.constant 0 : index
    %c2_62 = arith.constant 2 : index
    %c0_63 = arith.constant 0 : index
    %78 = vector.load %arg5[%c0_61, %c2_62, %c0_63] : memref<2x18x128xf32, #tpu.memory_space<vmem>>, vector<2x16x128xf32>
    %79 = vector.shape_cast %78 : vector<2x16x128xf32> to vector<32x128xf32>
    %80 = arith.truncf %79 : vector<32x128xf32> to vector<32x128xbf16>
    %c2_64 = arith.constant 2 : index
    %c0_65 = arith.constant 0 : index
    %c0_66 = arith.constant 0 : index
    %81 = vector.load %arg2[%c2_64, %c0_65, %c0_66] : memref<3x128x128xbf16, #tpu.memory_space<vmem>>, vector<1x128x128xbf16>
    %82 = vector.shape_cast %81 : vector<1x128x128xbf16> to vector<128x128xbf16>
    %cst_67 = arith.constant dense<0.000000e+00> : vector<32x128xf32>
    %83 = tpu.matmul %80, %82, %cst_67 {dimension_numbers = #tpu.dot_dimension_numbers<[1], [0], [0], [1], [0, 0, 1, 1], [], []>} : vector<32x128xbf16>, vector<128x128xbf16>, vector<32x128xf32> -> vector<32x128xf32>
    %84 = arith.addf %77, %83 : vector<32x128xf32>
    %cst_68 = arith.constant dense<0.000000e+00> : vector<128xf32>
    %85 = vector.multi_reduction <add>, %84, %cst_68 [0] : vector<32x128xf32> to vector<128xf32>
    %86 = vector.shape_cast %85 : vector<128xf32> to vector<1x128xf32>
    %87 = arith.mulf %84, %84 : vector<32x128xf32>
    %cst_69 = arith.constant dense<0.000000e+00> : vector<128xf32>
    %88 = vector.multi_reduction <add>, %87, %cst_69 [0] : vector<32x128xf32> to vector<128xf32>
    %89 = vector.shape_cast %88 : vector<128xf32> to vector<1x128xf32>
    %90 = tpu.concatenate %86, %89 in 0 : vector<1x128xf32>, vector<1x128xf32> -> vector<2x128xf32>
    %c8_i32_70 = arith.constant 8 : i32
    %91 = tpu.dynamic_rotate %90 by %c8_i32_70 dim 1 : vector<2x128xf32>, i32 -> vector<2x128xf32>
    %92 = arith.addf %90, %91 : vector<2x128xf32>
    %c16_i32_71 = arith.constant 16 : i32
    %93 = tpu.dynamic_rotate %92 by %c16_i32_71 dim 1 : vector<2x128xf32>, i32 -> vector<2x128xf32>
    %94 = arith.addf %92, %93 : vector<2x128xf32>
    %c32_i32_72 = arith.constant 32 : i32
    %95 = tpu.dynamic_rotate %94 by %c32_i32_72 dim 1 : vector<2x128xf32>, i32 -> vector<2x128xf32>
    %96 = arith.addf %94, %95 : vector<2x128xf32>
    %c64_i32_73 = arith.constant 64 : i32
    %97 = tpu.dynamic_rotate %96 by %c64_i32_73 dim 1 : vector<2x128xf32>, i32 -> vector<2x128xf32>
    %98 = arith.addf %96, %97 : vector<2x128xf32>
    %cst_74 = arith.constant 0.001953125 : f32
    %99 = vector.broadcast %cst_74 : f32 to vector<2x128xf32>
    %100 = arith.mulf %98, %99 : vector<2x128xf32>
    %101 = vector.extract_strided_slice %100 {offsets = [0, 0], sizes = [1, 128], strides = [1, 1]} : vector<2x128xf32> to vector<1x128xf32>
    %102 = vector.extract_strided_slice %100 {offsets = [1, 0], sizes = [1, 128], strides = [1, 1]} : vector<2x128xf32> to vector<1x128xf32>
    %103 = arith.mulf %101, %101 : vector<1x128xf32>
    %104 = arith.subf %102, %103 : vector<1x128xf32>
    %cst_75 = arith.constant 0.000000e+00 : f32
    %105 = vector.broadcast %cst_75 : f32 to vector<1x128xf32>
    %106 = arith.maximumf %104, %105 : vector<1x128xf32>
    %107 = vector.broadcast %101 : vector<1x128xf32> to vector<32x128xf32>
    %108 = arith.subf %84, %107 : vector<32x128xf32>
    %cst_76 = arith.constant 9.99999974E-6 : f32
    %109 = vector.broadcast %cst_76 : f32 to vector<1x128xf32>
    %110 = arith.addf %106, %109 : vector<1x128xf32>
    %111 = math.rsqrt %110 : vector<1x128xf32>
    %112 = vector.broadcast %111 : vector<1x128xf32> to vector<32x128xf32>
    %113 = arith.mulf %108, %112 : vector<32x128xf32>
    %cst_77 = arith.constant 0.000000e+00 : f32
    %114 = vector.broadcast %cst_77 : f32 to vector<32x128xf32>
    %115 = arith.maximumf %113, %114 : vector<32x128xf32>
    %c0_78 = arith.constant 0 : index
    %c0_79 = arith.constant 0 : index
    %116 = vector.load %arg3[%c0_78, %c0_79] : memref<32x128xf32, #tpu.memory_space<vmem>>, vector<32x128xf32>
    tpu.vector_store %arg3[%c0_78, %c0_79], %115 {strides = array<i32>} : memref<32x128xf32, #tpu.memory_space<vmem>>, vector<32x128xf32>,
    return
  }
}

</mosaic_0001>

<bundles_post_ra>
// kernel: deep_conv_block.1
= control target key start
LH: loop header
LB: loop body
LE: loop exit
PB: predicated region body
PF: predicated region fallthrough
CT: control target
= control target key end

     0   :  { %vm15_vm0 = vcmask 516096   ;;  %v899_v3 = vmov 0.0   ;;  %vm24_vm1 = vcmask 523264   ;;  %vm246_vm2 = vcmask 1040384   ;;  %s902_s17 = smov 32   ;;  %s903_s18 = smov 64   ;;  %s1122_s1 = inlined_call_operand.vmem [shape: bf16[3,64,128], index: 1, kind: input, shape index: {}]   ;;  %s1123_s0 = inlined_call_operand.vmem [shape: f32[2,16,64], index: 0, kind: input, shape index: {}]   ;;  %s1124_s2 = inlined_call_operand.vmem [shape: bf16[3,128,128], index: 2, kind: input, shape index: {}]   ;;  %s1125_s3 = inlined_call_operand.vmem [shape: f32[32,128], index: 3, kind: output, shape index: {}]  }
   0x1   :  { %v853_v0 = vld [vmem:[%s1122_s1 + $0x38] sm:$0xff]  ;;  %16 = vst.msk [vmem:[#allocation2] sm:$0x1] %vm15_vm0, %v899_v3  ;;  %v852_v4 = vld [vmem:[%s1122_s1 + $0x30] sm:$0xff]  ;;  %v20_v7 = vld [vmem:[%s1123_s0] sm:$0xff] }
   0x2   :  { %v849_v1 = vld [vmem:[%s1122_s1 + $0x18] sm:$0xff]  ;;  %17 = vst.msk [vmem:[#allocation2 + $0x18] sm:$0x1] %vm15_vm0, %v899_v3  ;;  %92 = vmatpush.bf16.msra.mxu0 %v853_v0  ;;  %v848_v5 = vld [vmem:[%s1122_s1 + $0x10] sm:$0xff]  ;;  %v21_v8 = vld [vmem:[%s1123_s0 + $0x8] sm:$0xff] }
   0x3   :  { %v857_v2 = vld [vmem:[%s1122_s1 + $0x58] sm:$0xff]  ;;  %141 = vmatpush.bf16.msra.mxu1 %v849_v1  ;;  %18 = vst.msk [vmem:[#allocation2 + $0x11] sm:$0x1] %vm15_vm0, %v899_v3  ;;  %v856_v6 = vld [vmem:[%s1122_s1 + $0x50] sm:$0xff]  ;;  %v851_v9 = vld [vmem:[%s1122_s1 + $0x28] sm:$0xff] }
   0x4   :  { %205 = vmatpush.bf16.msra.mxu2 %v857_v2  ;;  %19 = vst.msk [vmem:[#allocation2 + $0x29] sm:$0x1] %vm15_vm0, %v899_v3  ;;  %v847_v10 = vld [vmem:[%s1122_s1 + $0x8] sm:$0xff]  ;;  %v22_v12 = vld [vmem:[%s1123_s0 + $0x10] sm:$0xff]  ;;  %v23_v13 = vld [vmem:[%s1123_s0 + $0x18] sm:$0xff]  ;;  %s900_s0 = smov 8  }
   0x5   :  { %292 = vst [vmem:[#allocation3] sm:$0x1] %v899_v3  ;;  %v855_v11 = vld [vmem:[%s1122_s1 + $0x48] sm:$0xff]  ;;  %v850_v14 = vld [vmem:[%s1122_s1 + $0x20] sm:$0xff] }
   0x6   :  { %25 = vst.msk [vmem:[#allocation2 + $0x1] sm:$0xff] %vm24_vm1, %v20_v7  ;;  %93 = vmatpush.bf16.msra.mxu0 %v852_v4  ;;  %v846_v15 = vld [vmem:[%s1122_s1] sm:$0xff] }
   0x7   :  { %142 = vmatpush.bf16.msra.mxu1 %v848_v5  ;;  %26 = vst.msk [vmem:[#allocation2 + $0x9] sm:$0xff] %vm24_vm1, %v21_v8  ;;  %v854_v16 = vld [vmem:[%s1122_s1 + $0x40] sm:$0xff]  ;;  %s901_s1 = smov 16  }
   0x8   :  { %206 = vmatpush.bf16.msra.mxu2 %v856_v6  ;;  %293 = vst [vmem:[#allocation3 + $0x18] sm:$0x1] %v899_v3 }
   0x9   :  { %294 = vst [vmem:[#allocation3 + $0x11] sm:$0x1] %v899_v3 }
   0xa   :  { %295 = vst [vmem:[#allocation3 + $0x29] sm:$0x1] %v899_v3  ;;  %94 = vmatpush.bf16.msra.mxu0 %v851_v9 }
   0xb   :  { %143 = vmatpush.bf16.msra.mxu1 %v847_v10  ;;  %27 = vst.msk [vmem:[#allocation2 + $0x19] sm:$0xff] %vm24_vm1, %v22_v12 }
   0xc   :  { %207 = vmatpush.bf16.msra.mxu2 %v855_v11  ;;  %28 = vst.msk [vmem:[#allocation2 + $0x21] sm:$0xff] %vm24_vm1, %v23_v13 }
   0xd   :  { %v43_v17 = vld [vmem:[#allocation2 + $0x1] sm:$0xff] }
   0xe   :  { %v29_v18 = vld [vmem:[#allocation2] sm:$0xff]  ;;  %v44_v19 = vld [vmem:[#allocation2 + $0x9] sm:$0xff]  ;;  %95 = vmatpush.bf16.msra.mxu0 %v850_v14 }
   0xf   :  { %v30_v20 = vld [vmem:[#allocation2 + $0x8] sm:$0xff]  ;;  %144 = vmatpush.bf16.msra.mxu1 %v846_v15  ;;  %v47_v22 = vpack.c.bf16 %v44_v19, %v43_v17 }
  0x10   :  { %v156_v21 = vld [vmem:[#allocation2 + $0x2] sm:$0xff]  ;;  %v33_v23 = vpack.c.bf16 %v30_v20, %v29_v18  ;;  %v157_v24 = vld [vmem:[#allocation2 + $0xa] sm:$0xff]  ;;  %208 = vmatpush.bf16.msra.mxu2 %v854_v16  ;;  %v873_v20 = vld [vmem:[%s1124_s2 + $0x78] sm:$0xff] }
  0x11   :  { %v160_v25 = vpack.c.bf16 %v157_v24, %v156_v21  ;;  %672 = vmatmul.msk.bf16.vlgmr.msra.gmra.mxu0 %vm24_vm1, %v47_v22  ;;  %393 = vmatpush.bf16.msra.mxu3 %v873_v20  ;;  %v872_v21 = vld [vmem:[%s1124_s2 + $0x70] sm:$0xff]  ;;  %v865_v22 = vld [vmem:[%s1124_s2 + $0x38] sm:$0xff]  ;;  %v871_v24 = vld [vmem:[%s1124_s2 + $0x68] sm:$0xff] }
  0x12   :  { %690 = vmatmul.msk.bf16.vlgmr.msra.gmra.mxu1 %vm24_vm1, %v33_v23  ;;  %v45_v26 = vld [vmem:[#allocation2 + $0x19] sm:$0xff]  ;;  %460 = vmatpush.bf16.msrb.mxu0 %v865_v22 }
  0x13   :  { %716 = vmatmul.msk.bf16.vlgmr.msra.gmra.mxu2 %vm24_vm1, %v160_v25  ;;  %v46_v27 = vld [vmem:[#allocation2 + $0x21] sm:$0xff]  ;;  %v31_v28 = vld [vmem:[#allocation2 + $0x18] sm:$0xff]  ;;  %v864_v25 = vld [vmem:[%s1124_s2 + $0x30] sm:$0xff] }
  0x14   :  { %v32_v29 = vld [vmem:[#allocation2 + $0x20] sm:$0xff]  ;;  %v48_v32 = vpack.c.bf16 %v46_v27, %v45_v26  ;;  %v881_v23 = vld [vmem:[%s1124_s2 + $0xb8] sm:$0xff]  ;;  %882 = vmatpush.bf16.msrb.mxu2 %v865_v22  ;;  %v880_v26 = vld [vmem:[%s1124_s2 + $0xb0] sm:$0xff] }
  0x15   :  { %v158_v30 = vld [vmem:[#allocation2 + $0x1a] sm:$0xff]  ;;  %v159_v31 = vld [vmem:[#allocation2 + $0x22] sm:$0xff]  ;;  %v34_v33 = vpack.c.bf16 %v32_v29, %v31_v28  ;;  %394 = vmatpush.bf16.msra.mxu3 %v872_v21  ;;  %550 = vmatpush.bf16.msrb.mxu1 %v881_v23 }
  0x16   :  { %v161_v34 = vpack.c.bf16 %v159_v31, %v158_v30  ;;  %v870_v27 = vld [vmem:[%s1124_s2 + $0x60] sm:$0xff]  ;;  %461 = vmatpush.bf16.msrb.mxu0 %v864_v25  ;;  %v863_v28 = vld [vmem:[%s1124_s2 + $0x28] sm:$0xff]  ;;  %v869_v30 = vld [vmem:[%s1124_s2 + $0x58] sm:$0xff] }
  0x17   :  { %v879_v29 = vld [vmem:[%s1124_s2 + $0xa8] sm:$0xff]  ;;  %v862_v31 = vld [vmem:[%s1124_s2 + $0x20] sm:$0xff] }
  0x18   :  { %883 = vmatpush.bf16.msrb.mxu2 %v864_v25 }
  0x19   :  { %395 = vmatpush.bf16.msra.mxu3 %v871_v24  ;;  %551 = vmatpush.bf16.msrb.mxu1 %v880_v26 }
  0x1a   :  { %462 = vmatpush.bf16.msrb.mxu0 %v863_v28 }
  0x1c   :  { %884 = vmatpush.bf16.msrb.mxu2 %v863_v28 }
  0x1d   :  { %396 = vmatpush.bf16.msra.mxu3 %v870_v27  ;;  %552 = vmatpush.bf16.msrb.mxu1 %v879_v29 }
  0x1e   :  { %463 = vmatpush.bf16.msrb.mxu0 %v862_v31 }
  0x20   :  { %885 = vmatpush.bf16.msrb.mxu2 %v862_v31 }
  0x21   :  { %673 = vmatmul.msk.bf16.gmra.mxu0 %vm24_vm1, %v48_v32  ;;  %397 = vmatpush.bf16.msra.mxu3 %v869_v30  ;;  %v878_v32 = vld [vmem:[%s1124_s2 + $0xa0] sm:$0xff] }
  0x22   :  { %691 = vmatmul.msk.bf16.gmra.mxu1 %vm24_vm1, %v34_v33  ;;  %v868_v33 = vld [vmem:[%s1124_s2 + $0x50] sm:$0xff] }
  0x23   :  { %717 = vmatmul.msk.bf16.gmra.mxu2 %vm24_vm1, %v161_v34  ;;  %553 = vmatpush.bf16.msrb.mxu1 %v878_v32 }
  0x25   :  { %398 = vmatpush.bf16.msra.mxu3 %v868_v33 }
  0x8e   :  { %v97_v35 = vpop.f32.mrf.mxu0 }
  0x8f   :  { %v146_v36 = vpop.f32.mrf.mxu1 }
  0x90   :  { %v147_v43 = vadd.f32 %v146_v36, %v97_v35 }
  0x96   :  { %v210_v37 = vpop.f32.mrf.mxu2  ;;  %v99_v38 = vpop.f32.mrf.mxu0 }
  0x97   :  { %v148_v39 = vpop.f32.mrf.mxu1  ;;  %v988_v48 = vadd.f32 %v210_v37, %v147_v43  ;;  %v861_v37 = vld [vmem:[%s1124_s2 + $0x18] sm:$0xff]  ;;  %v876_v43 = vld [vmem:[%s1124_s2 + $0x90] sm:$0xff] }
  0x98   :  { %v149_v44 = vadd.f32 %v148_v39, %v99_v38  ;;  %v877_v38 = vld [vmem:[%s1124_s2 + $0x98] sm:$0xff]  ;;  %v867_v39 = vld [vmem:[%s1124_s2 + $0x48] sm:$0xff]  ;;  %464 = vmatpush.bf16.msrb.mxu0 %v861_v37  ;;  %886 = vmatpush.bf16.msrb.mxu2 %v861_v37 }
  0x99   :  { %v233_v53 = vmul.f32 %v988_v48, %v988_v48  ;;  %554 = vmatpush.bf16.msrb.mxu1 %v877_v38  ;;  %399 = vmatpush.bf16.msra.mxu3 %v867_v39 }
  0x9d   :  { %555 = vmatpush.bf16.msrb.mxu1 %v876_v43 }
  0x9e   :  { %v212_v40 = vpop.f32.mrf.mxu2  ;;  %v102_v41 = vpop.f32.mrf.mxu0 }
  0x9f   :  { %v151_v42 = vpop.f32.mrf.mxu1  ;;  %v986_v47 = vadd.f32 %v212_v40, %v149_v44  ;;  %v866_v44 = vld [vmem:[%s1124_s2 + $0x40] sm:$0xff] }
  0xa0   :  { %v152_v45 = vadd.f32 %v151_v42, %v102_v41  ;;  %v860_v42 = vld [vmem:[%s1124_s2 + $0x10] sm:$0xff]  ;;  %400 = vmatpush.bf16.msra.mxu3 %v866_v44 }
  0xa1   :  { %v234_v52 = vmul.f32 %v986_v47, %v986_v47  ;;  %v224_v54 = vadd.f32 %v986_v47, %v988_v48  ;;  %465 = vmatpush.bf16.msrb.mxu0 %v860_v42  ;;  %887 = vmatpush.bf16.msrb.mxu2 %v860_v42 }
  0xa3   :  { %v237_v58 = vadd.f32 %v234_v52, %v233_v53  ;;  %v858_v53 = vld [vmem:[%s1124_s2] sm:$0xff] }
  0xa6   :  { %v215_v46 = vpop.f32.mrf.mxu2  ;;  %v104_v50 = vpop.f32.mrf.mxu0 }
  0xa7   :  { %v990_v49 = vadd.f32 %v215_v46, %v152_v45  ;;  %v153_v51 = vpop.f32.mrf.mxu1  ;;  %v859_v46 = vld [vmem:[%s1124_s2 + $0x8] sm:$0xff] }
  0xa8   :  { %v154_v56 = vadd.f32 %v153_v51, %v104_v50  ;;  %v875_v50 = vld [vmem:[%s1124_s2 + $0x88] sm:$0xff]  ;;  %466 = vmatpush.bf16.msrb.mxu0 %v859_v46  ;;  %888 = vmatpush.bf16.msrb.mxu2 %v859_v46 }
  0xa9   :  { %v235_v55 = vmul.f32 %v990_v49, %v990_v49  ;;  %v225_v59 = vadd.f32 %v224_v54, %v990_v49  ;;  %556 = vmatpush.bf16.msrb.mxu1 %v875_v50  ;;  %v874_v54 = vld [vmem:[%s1124_s2 + $0x80] sm:$0xff] }
  0xab   :  { %v238_v61 = vadd.f32 %v237_v58, %v235_v55 }
  0xac   :  { %467 = vmatpush.bf16.msrb.mxu0 %v858_v53  ;;  %889 = vmatpush.bf16.msrb.mxu2 %v858_v53 }
  0xad   :  { %557 = vmatpush.bf16.msrb.mxu1 %v874_v54 }
  0xae   :  { %v217_v57 = vpop.f32.mrf.mxu2 }
  0xaf   :  { %v1001_v60 = vadd.f32 %v217_v57, %v154_v56 }
  0xb1   :  { %v226_v62 = vadd.f32 %v225_v59, %v1001_v60  ;;  %v236_v63 = vmul.f32 %v1001_v60, %v1001_v60 }
  0xb3   :  { %v227_v0 = vrot.slane %v226_v62, 4  ;;  %v239_v1 = vadd.f32 %v238_v61, %v236_v63 }
  0xb5   :  { %v228_v2 = vadd.f32 %v227_v0, %v226_v62  ;;  %v240_v3 = vrot.slane %v239_v1, 4 }
  0xb7   :  { %v229_v4 = vrot.slane %v228_v2, 2  ;;  %v241_v5 = vadd.f32 %v240_v3, %v239_v1 }
  0xb9   :  { %v230_v6 = vadd.f32 %v229_v4, %v228_v2  ;;  %v242_v7 = vrot.slane %v241_v5, 2 }
  0xbb   :  { %v231_v8 = vrot.slane %v230_v6, 1  ;;  %v243_v9 = vadd.f32 %v242_v7, %v241_v5 }
  0xbd   :  { %v244_v10 = vrot.slane %v243_v9, 1  ;;  %v232_v11 = vadd.f32 %v231_v8, %v230_v6 }
  0xbf   :  { %v245_v12 = vadd.f32 %v244_v10, %v243_v9 }
  0xc1   :  { %v247_v13 = vsel %vm246_vm2, %v232_v11, %v245_v12 }
  0xc2   :  { %248 = vrot.lane.b32.xlu0 %v247_v13, %s900_s0 }
 0x134   :  { %v249_v14 = vpop.permute.xlu0 %248 }
 0x135   :  { %v250_v15 = vadd.f32 %v249_v14, %v247_v13 }
 0x137   :  { %251 = vrot.lane.b32.xlu0 %v250_v15, %s901_s1 }
 0x1a9   :  { %v252_v16 = vpop.permute.xlu0 %251 }
 0x1aa   :  { %v253_v17 = vadd.f32 %v252_v16, %v250_v15 }
 0x1ac   :  { %254 = vrot.lane.b32.xlu1 %v253_v17, %s902_s17 }
 0x21e   :  { %v255_v18 = vpop.permute.xlu1 %254 }
 0x21f   :  { %v256_v19 = vadd.f32 %v255_v18, %v253_v17 }
 0x221   :  { %257 = vrot.lane.b32.xlu1 %v256_v19, %s903_s18 }
 0x293   :  { %v258_v34 = vpop.permute.xlu1 %257 }
 0x294   :  { %v259_v35 = vadd.f32 %v258_v34, %v256_v19 }
 0x296   :  { %v260_v36 = vmul.f32 0.001953125, %v259_v35 }
 0x298   :  { %v261_v40 = vmul.f32 %v260_v36, %v260_v36  ;;  %v267_v59 = vperm.slane %v260_v36, 0 }
 0x29a   :  { %v263_v41 = vrot.slane %v261_v40, 7  ;;  %v268_v63 = vsub.f32 %v988_v48, %v267_v59  ;;  %v269_v1 = vsub.f32 %v986_v47, %v267_v59  ;;  %v270_v2 = vsub.f32 %v990_v49, %v267_v59 }
 0x29b   :  { %v271_v3 = vsub.f32 %v1001_v60, %v267_v59 }
 0x29c   :  { %v265_v45 = vsub.f32 %v260_v36, %v263_v41 }
 0x29e   :  { %v266_v51 = vmax.f32 %v265_v45, 0.0 }
 0x2a0   :  { %v272_v52 = vadd.f32 1e-05, %v266_v51 }
 0x2a2   :  { %895 = vrsqrt.f32 %v272_v52  ;;  %vm279_vm4 = vweird.f32 %v272_v52 }
 0x2a8   :  { %v896_v55 = vpop.eup %895 }
 0x2a9   :  { %v274_v56 = vmul.f32 %v896_v55, %v272_v52  ;;  %vm280_vm3 = vweird.f32 %v896_v55 }
 0x2aa   :  { %vm281_vm5 = vmor %vm279_vm4, %vm280_vm3 }
 0x2ab   :  { %v275_v57 = vmul.f32 %v896_v55, %v274_v56 }
 0x2ad   :  { %v276_v58 = vmul.f32 0.5, %v275_v57 }
 0x2af   :  { %v277_v61 = vsub.f32 1.5, %v276_v58 }
 0x2b1   :  { %v278_v62 = vmul.f32 %v896_v55, %v277_v61 }
 0x2b3   :  { %v282_v0 = vsel %vm281_vm5, %v896_v55, %v278_v62 }
 0x2b4   :  { %v283_v4 = vperm.slane %v282_v0, 1 }
 0x2b6   :  { %v284_v5 = vmul.f32 %v283_v4, %v268_v63  ;;  %v285_v6 = vmul.f32 %v283_v4, %v269_v1  ;;  %v286_v7 = vmul.f32 %v283_v4, %v270_v2  ;;  %v287_v8 = vmul.f32 %v283_v4, %v271_v3 }
 0x2b8   :  { %v288_v9 = vmax.f32 %v284_v5, 0.0  ;;  %v289_v10 = vmax.f32 %v285_v6, 0.0  ;;  %v290_v11 = vmax.f32 %v286_v7, 0.0  ;;  %v291_v12 = vmax.f32 %v287_v8, 0.0 }
 0x2ba   :  { %296 = vst [vmem:[#allocation3 + $0x1] sm:$0xff] %v288_v9  ;;  %v326_v13 = vpack.c.bf16 %v289_v10, %v288_v9  ;;  %v327_v19 = vpack.c.bf16 %v291_v12, %v290_v11 }
 0x2bb   :  { %297 = vst [vmem:[#allocation3 + $0x9] sm:$0xff] %v289_v10 }
 0x2bc   :  { %298 = vst [vmem:[#allocation3 + $0x19] sm:$0xff] %v290_v11  ;;  %401 = vmatmul.bf16.vlgmr.msra.gmra.mxu3 %v326_v13 }
 0x2bd   :  { %299 = vst [vmem:[#allocation3 + $0x21] sm:$0xff] %v291_v12 }
 0x2c1   :  { %v300_v47 = vld [vmem:[#allocation3] sm:$0xff] }
 0x2c2   :  { %v301_v48 = vld [vmem:[#allocation3 + $0x8] sm:$0xff] }
 0x2c3   :  { %v479_v49 = vld [vmem:[#allocation3 + $0x2] sm:$0xff]  ;;  %v480_v14 = vld [vmem:[#allocation3 + $0xa] sm:$0xff]  ;;  %v304_v60 = vpack.c.bf16 %v301_v48, %v300_v47  ;;  %v302_v15 = vld [vmem:[#allocation3 + $0x18] sm:$0xff] }
 0x2c4   :  { %v483_v16 = vpack.c.bf16 %v480_v14, %v479_v49  ;;  %v303_v17 = vld [vmem:[#allocation3 + $0x20] sm:$0xff] }
 0x2c5   :  { %468 = vmatmul.bf16.vlgmr.msrb.gmra.mxu0 %v304_v60  ;;  %v305_v18 = vpack.c.bf16 %v303_v17, %v302_v15  ;;  %v481_v20 = vld [vmem:[#allocation3 + $0x1a] sm:$0xff]  ;;  %v482_v21 = vld [vmem:[#allocation3 + $0x22] sm:$0xff] }
 0x2c6   :  { %558 = vmatmul.bf16.vlgmr.msrb.gmra.mxu1 %v483_v16  ;;  %v484_v22 = vpack.c.bf16 %v482_v21, %v481_v20 }
 0x2c7   :  { %473 = vmatmul.bf16.vlgmr.msrb.gmra.mxu2 %v305_v18 }
 0x2cc   :  { %406 = vmatmul.bf16.gmra.mxu3 %v327_v19 }
 0x2d6   :  { %563 = vmatmul.bf16.gmra.mxu1 %v484_v22 }
 0x33f   :  { %v402_v23 = vpop.f32.mrf.mxu3 }
 0x342   :  { %v469_v25 = vpop.f32.mrf.mxu0 }
 0x343   :  { %v559_v24 = vpop.f32.mrf.mxu1  ;;  %v470_v32 = vadd.f32 %v469_v25, %v402_v23 }
 0x345   :  { %v1089_v36 = vadd.f32 %v559_v24, %v470_v32 }
 0x347   :  { %v404_v26 = vpop.f32.mrf.mxu3  ;;  %v582_v42 = vmul.f32 %v1089_v36, %v1089_v36 }
 0x34a   :  { %v474_v28 = vpop.f32.mrf.mxu2  ;;  %v471_v29 = vpop.f32.mrf.mxu0 }
 0x34b   :  { %v561_v27 = vpop.f32.mrf.mxu1  ;;  %v472_v31 = vadd.f32 %v471_v29, %v404_v26 }
 0x34d   :  { %v1087_v35 = vadd.f32 %v561_v27, %v472_v31 }
 0x34f   :  { %v407_v30 = vpop.f32.mrf.mxu3  ;;  %v583_v40 = vmul.f32 %v1087_v35, %v1087_v35  ;;  %v573_v43 = vadd.f32 %v1087_v35, %v1089_v36 }
 0x350   :  { %v475_v33 = vadd.f32 %v474_v28, %v407_v30 }
 0x351   :  { %v586_v46 = vadd.f32 %v583_v40, %v582_v42 }
 0x352   :  { %v476_v38 = vpop.f32.mrf.mxu2 }
 0x353   :  { %v564_v34 = vpop.f32.mrf.mxu1 }
 0x354   :  { %v1091_v37 = vadd.f32 %v564_v34, %v475_v33 }
 0x356   :  { %v584_v44 = vmul.f32 %v1091_v37, %v1091_v37  ;;  %v574_v50 = vadd.f32 %v573_v43, %v1091_v37 }
 0x357   :  { %v409_v39 = vpop.f32.mrf.mxu3 }
 0x358   :  { %v477_v41 = vadd.f32 %v476_v38, %v409_v39  ;;  %v587_v52 = vadd.f32 %v586_v46, %v584_v44 }
 0x35b   :  { %v566_v45 = vpop.f32.mrf.mxu1 }
 0x35c   :  { %v572_v51 = vadd.f32 %v566_v45, %v477_v41 }
 0x35e   :  { %v575_v53 = vadd.f32 %v574_v50, %v572_v51  ;;  %v585_v54 = vmul.f32 %v572_v51, %v572_v51 }
 0x360   :  { %v576_v55 = vrot.slane %v575_v53, 4  ;;  %v588_v56 = vadd.f32 %v587_v52, %v585_v54 }
 0x362   :  { %v577_v57 = vadd.f32 %v576_v55, %v575_v53  ;;  %v589_v58 = vrot.slane %v588_v56, 4 }
 0x364   :  { %v578_v59 = vrot.slane %v577_v57, 2  ;;  %v590_v61 = vadd.f32 %v589_v58, %v588_v56 }
 0x366   :  { %v579_v62 = vadd.f32 %v578_v59, %v577_v57  ;;  %v591_v63 = vrot.slane %v590_v61, 2 }
 0x368   :  { %v580_v0 = vrot.slane %v579_v62, 1  ;;  %v592_v1 = vadd.f32 %v591_v63, %v590_v61 }
 0x36a   :  { %v593_v2 = vrot.slane %v592_v1, 1  ;;  %v581_v3 = vadd.f32 %v580_v0, %v579_v62 }
 0x36c   :  { %v594_v4 = vadd.f32 %v593_v2, %v592_v1 }
 0x36e   :  { %v595_v5 = vsel %vm246_vm2, %v581_v3, %v594_v4 }
 0x36f   :  { %596 = vrot.lane.b32.xlu2 %v595_v5, %s900_s0 }
 0x3c9   :  { %v597_v6 = vpop.permute.xlu2 %596 }
 0x3ca   :  { %v598_v7 = vadd.f32 %v597_v6, %v595_v5 }
 0x3cc   :  { %599 = vrot.lane.b32.xlu2 %v598_v7, %s901_s1 }
 0x426   :  { %v600_v8 = vpop.permute.xlu2 %599 }
 0x427   :  { %v601_v9 = vadd.f32 %v600_v8, %v598_v7 }
 0x429   :  { %602 = vrot.lane.b32.xlu0 %v601_v9, %s902_s17 }
 0x49b   :  { %v603_v10 = vpop.permute.xlu0 %602 }
 0x49c   :  { %v604_v11 = vadd.f32 %v603_v10, %v601_v9 }
 0x49e   :  { %605 = vrot.lane.b32.xlu1 %v604_v11, %s903_s18 }
 0x510   :  { %v606_v12 = vpop.permute.xlu1 %605 }
 0x511   :  { %v607_v13 = vadd.f32 %v606_v12, %v604_v11 }
 0x513   :  { %v608_v47 = vmul.f32 0.001953125, %v607_v13 }
 0x515   :  { %v609_v48 = vmul.f32 %v608_v47, %v608_v47  ;;  %v615_v20 = vperm.slane %v608_v47, 0 }
 0x517   :  { %v611_v49 = vrot.slane %v609_v48, 7  ;;  %v616_v23 = vsub.f32 %v1089_v36, %v615_v20  ;;  %v617_v25 = vsub.f32 %v1087_v35, %v615_v20  ;;  %v618_v26 = vsub.f32 %v1091_v37, %v615_v20 }
 0x518   :  { %v619_v27 = vsub.f32 %v572_v51, %v615_v20 }
 0x519   :  { %v613_v14 = vsub.f32 %v608_v47, %v611_v49 }
 0x51b   :  { %v614_v60 = vmax.f32 %v613_v14, 0.0 }
 0x51d   :  { %v620_v15 = vadd.f32 1e-05, %v614_v60 }
 0x51f   :  { %897 = vrsqrt.f32 %v620_v15  ;;  %vm627_vm7 = vweird.f32 %v620_v15 }
 0x525   :  { %v898_v16 = vpop.eup %897 }
 0x526   :  { %v622_v17 = vmul.f32 %v898_v16, %v620_v15  ;;  %vm628_vm6 = vweird.f32 %v898_v16 }
 0x527   :  { %vm629_vm8 = vmor %vm627_vm7, %vm628_vm6 }
 0x528   :  { %v623_v18 = vmul.f32 %v898_v16, %v622_v17 }
 0x52a   :  { %v624_v19 = vmul.f32 0.5, %v623_v18 }
 0x52c   :  { %v625_v21 = vsub.f32 1.5, %v624_v19 }
 0x52e   :  { %v626_v22 = vmul.f32 %v898_v16, %v625_v21 }
 0x530   :  { %v630_v24 = vsel %vm629_vm8, %v898_v16, %v626_v22 }
 0x531   :  { %v631_v28 = vperm.slane %v630_v24, 1 }
 0x533   :  { %v632_v29 = vmul.f32 %v631_v28, %v616_v23  ;;  %v633_v30 = vmul.f32 %v631_v28, %v617_v25  ;;  %v634_v31 = vmul.f32 %v631_v28, %v618_v26  ;;  %v635_v32 = vmul.f32 %v631_v28, %v619_v27 }
 0x535   :  { %v636_v33 = vmax.f32 %v632_v29, 0.0  ;;  %v637_v34 = vmax.f32 %v633_v30, 0.0  ;;  %v638_v38 = vmax.f32 %v634_v31, 0.0  ;;  %v639_v39 = vmax.f32 %v635_v32, 0.0 }
 0x537   :  { %640 = vst [vmem:[%s1125_s3] sm:$0xff] %v636_v33 }
 0x538   :  { %641 = vst [vmem:[%s1125_s3 + $0x8] sm:$0xff] %v637_v34 }
 0x539   :  { %642 = vst [vmem:[%s1125_s3 + $0x10] sm:$0xff] %v638_v38 }
 0x53a   :  { %643 = vst [vmem:[%s1125_s3 + $0x18] sm:$0xff] %v639_v39 }

</bundles_post_ra>
